<compile_context>
chip_gen: v7x
topology: tpu7x:2x2x1
jax: 0.10.0
libtpu: 0.0.40
codegen_flags: <defaults>
</compile_context>

<pallas_src>
import functools

import jax
import jax.numpy as jnp
from jax.experimental import pallas as pl
from jax.experimental.pallas import tpu as pltpu


# ---------------------------------------------------------------------------
# Kernel: one fused invocation, no grid.
#   in_ref : (3, n_pad) f32  row 0 = params (logits / log_vars, zero-padded)
#                            row 1 = raw losses (zero-padded)
#                            row 2 = ema buffer (zero-padded)
#   out_ref: (3, n_pad) f32  row 0 = weights        (lanes [0, n))
#                            row 1 = updated ema    (lanes [0, n))
#                            row 2 = total loss     (broadcast across lanes)
# ---------------------------------------------------------------------------
def _alw_kernel(in_ref, out_ref, *, mode, tau, ema_beta, n):
    tile = in_ref[...]                       # single vld of the whole (3, n_pad) tile
    n_pad = tile.shape[1]

    params = tile[0:1, :]                    # (1, n_pad)
    losses = tile[1:2, :]                    # (1, n_pad)
    ema = tile[2:3, :]                       # (1, n_pad)

    lane = jax.lax.broadcasted_iota(jnp.int32, (1, n_pad), 1)
    valid = lane < n                         # padded lanes are False

    # ---- fused EMA update + loss normalization (ema_beta is a static float) ----
    if ema_beta > 0.0:
        new_ema = ema * ema_beta + losses * (1.0 - ema_beta)
        norm_losses = losses / (new_ema + 1e-8)      # padded lanes: 0/(0+eps) = 0
    else:
        new_ema = ema
        norm_losses = losses

    if mode == "softmax":
        logits = jnp.where(valid, params * (1.0 / tau), -jnp.inf)
        m = jnp.max(logits, axis=-1, keepdims=True)
        e = jnp.exp(logits - m)                      # padded lanes -> exp(-inf) = 0
        denom = jnp.sum(e, axis=-1, keepdims=True)
        weights = e / denom                          # exact division (no approx recip)
        # VPU multiply + XLU lane reduction; intentionally NOT an MXU matmul.
        total = jnp.sum(weights * norm_losses, axis=-1, keepdims=True)      # (1, 1)
    else:  # 'uncertainty' — uses RAW losses for `total` (as in the PyTorch code)
        inv_sigma2 = jnp.where(valid, jnp.exp(-params), 0.0)
        total = 0.5 * jnp.sum(
            jnp.where(valid, inv_sigma2 * losses + params, 0.0),
            axis=-1, keepdims=True)
        weights = inv_sigma2 / jnp.sum(inv_sigma2, axis=-1, keepdims=True)

    # ---- direct sublane-row stores (lane-dense, unmasked along lanes) ----
    out_ref[0:1, :] = weights
    out_ref[1:2, :] = new_ema
    out_ref[2:3, :] = jnp.broadcast_to(total, (1, n_pad))


# ---------------------------------------------------------------------------
# Jitted implementation (packing + pallas_call + unpacking fuse with the caller)
# ---------------------------------------------------------------------------
@functools.partial(jax.jit, static_argnames=("mode", "tau", "ema_beta"))
def _alw_impl(losses, params, ema_loss, *, mode, tau, ema_beta):
    n = losses.shape[0]
    n_pad = max(((n + 127) // 128) * 128, 128)       # lane-dense last dim (>= 128)

    losses = losses.astype(jnp.float32)
    params = params.astype(jnp.float32)
    ema = (jnp.zeros((n,), jnp.float32) if ema_loss is None
           else ema_loss.astype(jnp.float32))

    # One stack + pad (no dynamic-update-slices into a zeros buffer).
    packed = jnp.pad(jnp.stack([params, losses, ema], axis=0),
                     ((0, 0), (0, n_pad - n)))

    kernel = functools.partial(_alw_kernel, mode=mode, tau=float(tau),
                               ema_beta=float(ema_beta), n=n)

    cost = pl.CostEstimate(
        flops=12 * n_pad,                 # ~O(n) VPU work
        transcendentals=n_pad,            # one exp row
        bytes_accessed=2 * 3 * n_pad * 4)  # one tile in, one tile out

    out = pl.pallas_call(
        kernel,
        out_shape=jax.ShapeDtypeStruct((3, n_pad), jnp.float32),
        in_specs=[pl.BlockSpec(memory_space=pltpu.VMEM)],
        out_specs=pl.BlockSpec(memory_space=pltpu.VMEM),
        cost_estimate=cost,
    )(packed)

    total = out[2, 0]
    weights = jax.lax.stop_gradient(out[0, :n])      # matches weights.detach()
    new_ema = jax.lax.stop_gradient(out[1, :n])      # buffer update is no-grad
    return total, weights, new_ema


# ---------------------------------------------------------------------------
# Public wrapper (accepts a pre-stacked (N,) losses array, or a list of scalars)
# ---------------------------------------------------------------------------
def adaptive_loss_weighting(loss_list, params, *, mode="softmax", tau=1.0,
                            ema_beta=0.0, ema_loss=None):
    assert mode in ("softmax", "uncertainty")
    if isinstance(loss_list, (list, tuple)):
        if len(loss_list) == 0:
            raise ValueError("adaptive_loss_weighting: empty loss list")
        losses = jnp.stack([jnp.asarray(l, jnp.float32) for l in loss_list])
    else:
        losses = jnp.asarray(loss_list, jnp.float32)
    if losses.shape[0] == 0:
        raise ValueError("adaptive_loss_weighting: empty loss vector")

    if ema_beta > 0:
        assert ema_loss is not None, "ema_loss buffer required when ema_beta > 0"
        ema_arg = jnp.asarray(ema_loss, jnp.float32)
    else:
        ema_arg = None

    total, weights, new_ema = _alw_impl(losses, params, ema_arg,
                                        mode=mode, tau=float(tau),
                                        ema_beta=float(ema_beta))
    if ema_beta > 0:
        return total, weights, new_ema
    return total, weights


# ---------------------------------------------------------------------------
# Pure-JAX reference for verification
# ---------------------------------------------------------------------------
def _reference(losses, params, *, mode="softmax", tau=1.0, ema_beta=0.0,
               ema_loss=None):
    losses = jnp.asarray(losses, jnp.float32)
    if ema_beta > 0:
        new_ema = ema_loss * ema_beta + losses * (1.0 - ema_beta)
        norm_losses = losses / (new_ema + 1e-8)
    else:
        new_ema = None
        norm_losses = losses
    if mode == "softmax":
        w = jax.nn.softmax(params / tau)
        total = jnp.dot(w, norm_losses)
    else:
        inv = jnp.exp(-params)
        total = 0.5 * jnp.sum(inv * losses + params)
        w = inv / jnp.sum(inv)
    if ema_beta > 0:
        return total, w, new_ema
    return total, w


if __name__ == "__main__":
    num_losses = 4

    key = jax.random.PRNGKey(0)
    k_loss, k_logit = jax.random.split(key)
    raw_losses = jax.random.uniform(k_loss, (num_losses,), jnp.float32,
                                    minval=0.1, maxval=2.0)

    # Module __init__ uses zeros for both parameter vectors.
    logits = jnp.zeros((num_losses,), jnp.float32)
    log_vars = jnp.zeros((num_losses,), jnp.float32)

    TOL = dict(rtol=1e-5, atol=1e-6)   # exact division now — tight tolerance

    # --- softmax mode, default config (tau=1.0, ema_beta=0.0) ---
    total_sm, w_sm = adaptive_loss_weighting(raw_losses, logits,
                                             mode="softmax", tau=1.0)
    jax.block_until_ready((total_sm, w_sm))
    ref_t, ref_w = _reference(raw_losses, logits, mode="softmax", tau=1.0)
    assert jnp.allclose(total_sm, ref_t, **TOL), (total_sm, ref_t)
    assert jnp.allclose(w_sm, ref_w, **TOL)

    # --- softmax mode with fused EMA update (non-trivial logits) ---
    logits_r = jax.random.normal(k_logit, (num_losses,), jnp.float32)
    ema0 = jnp.zeros((num_losses,), jnp.float32)
    total_e, w_e, new_ema = adaptive_loss_weighting(
        raw_losses, logits_r, mode="softmax", tau=0.5, ema_beta=0.9,
        ema_loss=ema0)
    jax.block_until_ready((total_e, w_e, new_ema))
    ref_te, ref_we, ref_ema = _reference(raw_losses, logits_r, mode="softmax",
                                         tau=0.5, ema_beta=0.9, ema_loss=ema0)
    assert jnp.allclose(new_ema, ref_ema, **TOL)
    assert jnp.allclose(total_e, ref_te, **TOL), (total_e, ref_te)
    assert jnp.allclose(w_e, ref_we, **TOL)

    # --- uncertainty mode ---
    total_un, w_un = adaptive_loss_weighting(raw_losses, log_vars,
                                             mode="uncertainty")
    jax.block_until_ready((total_un, w_un))
    ref_tu, ref_wu = _reference(raw_losses, log_vars, mode="uncertainty")
    assert jnp.allclose(total_un, ref_tu, **TOL), (total_un, ref_tu)
    assert jnp.allclose(w_un, ref_wu, **TOL)

    print("KERNEL_OK")
</pallas_src>

<mosaic_0001>
module attributes {stable_mosaic.version = 11 : i64} {
  func.func @_alw_kernel(%arg0: memref<3x128xf32, #tpu.memory_space<vmem>>, %arg1: memref<3x128xf32, #tpu.memory_space<vmem>>) attributes {dimension_semantics = [], scalar_prefetch = 0 : i64, scratch_operands = 0 : i64, tpu.core_type = #tpu.core_type<tc>} {
    %c0 = arith.constant 0 : index
    %c0_0 = arith.constant 0 : index
    %0 = vector.load %arg0[%c0, %c0_0] : memref<3x128xf32, #tpu.memory_space<vmem>>, vector<3x128xf32>
    %1 = vector.extract_strided_slice %0 {offsets = [0, 0], sizes = [1, 128], strides = [1, 1]} : vector<3x128xf32> to vector<1x128xf32>
    %2 = vector.extract_strided_slice %0 {offsets = [1, 0], sizes = [1, 128], strides = [1, 1]} : vector<3x128xf32> to vector<1x128xf32>
    %3 = vector.extract_strided_slice %0 {offsets = [2, 0], sizes = [1, 128], strides = [1, 1]} : vector<3x128xf32> to vector<1x128xf32>
    %4 = tpu.iota {dimensions = array<i32: 1>} : vector<1x128xi32>
    %c4_i32 = arith.constant 4 : i32
    %5 = vector.broadcast %c4_i32 : i32 to vector<1x128xi32>
    %6 = arith.cmpi slt, %4, %5 : vector<1x128xi32>
    %cst = arith.constant 1.000000e+00 : f32
    %7 = vector.broadcast %cst : f32 to vector<1x128xf32>
    %8 = arith.mulf %1, %7 : vector<1x128xf32>
    %cst_1 = arith.constant 0xFF800000 : f32
    %9 = vector.broadcast %cst_1 : f32 to vector<1x128xf32>
    %10 = arith.select %6, %8, %9 : vector<1x128xi1>, vector<1x128xf32>
    %cst_2 = arith.constant dense<0xFF800000> : vector<1xf32>
    %11 = vector.multi_reduction <maximumf>, %10, %cst_2 [1] : vector<1x128xf32> to vector<1xf32>
    %12 = vector.shape_cast %11 : vector<1xf32> to vector<1x1xf32>
    %13 = vector.broadcast %12 : vector<1x1xf32> to vector<1x128xf32>
    %14 = arith.subf %10, %13 : vector<1x128xf32>
    %15 = math.exp %14 : vector<1x128xf32>
    %cst_3 = arith.constant dense<0.000000e+00> : vector<1xf32>
    %16 = vector.multi_reduction <add>, %15, %cst_3 [1] : vector<1x128xf32> to vector<1xf32>
    %17 = vector.shape_cast %16 : vector<1xf32> to vector<1x1xf32>
    %18 = vector.broadcast %17 : vector<1x1xf32> to vector<1x128xf32>
    %19 = arith.divf %15, %18 : vector<1x128xf32>
    %20 = arith.mulf %19, %2 : vector<1x128xf32>
    %cst_4 = arith.constant dense<0.000000e+00> : vector<1xf32>
    %21 = vector.multi_reduction <add>, %20, %cst_4 [1] : vector<1x128xf32> to vector<1xf32>
    %22 = vector.shape_cast %21 : vector<1xf32> to vector<1x1xf32>
    %c0_5 = arith.constant 0 : index
    %c0_6 = arith.constant 0 : index
    %23 = vector.load %arg1[%c0_5, %c0_6] : memref<3x128xf32, #tpu.memory_space<vmem>>, vector<1x128xf32>
    tpu.vector_store %arg1[%c0_5, %c0_6], %19 {strides = array<i32>} : memref<3x128xf32, #tpu.memory_space<vmem>>, vector<1x128xf32>,
    %c1 = arith.constant 1 : index
    %c0_7 = arith.constant 0 : index
    %24 = vector.load %arg1[%c1, %c0_7] : memref<3x128xf32, #tpu.memory_space<vmem>>, vector<1x128xf32>
    tpu.vector_store %arg1[%c1, %c0_7], %3 {strides = array<i32>} : memref<3x128xf32, #tpu.memory_space<vmem>>, vector<1x128xf32>,
    %25 = vector.shape_cast %22 : vector<1x1xf32> to vector<1x1xf32>
    %26 = vector.broadcast %25 : vector<1x1xf32> to vector<1x128xf32>
    %c2 = arith.constant 2 : index
    %c0_8 = arith.constant 0 : index
    %27 = vector.load %arg1[%c2, %c0_8] : memref<3x128xf32, #tpu.memory_space<vmem>>, vector<1x128xf32>
    tpu.vector_store %arg1[%c2, %c0_8], %26 {strides = array<i32>} : memref<3x128xf32, #tpu.memory_space<vmem>>, vector<1x128xf32>,
    return
  }
}

</mosaic_0001>

<bundles_post_ra>
// kernel: _alw_impl.1
= control target key start
LH: loop header
LB: loop body
LE: loop exit
PB: predicated region body
PF: predicated region fallthrough
CT: control target
= control target key end

     0   :  { %v9_v0 = vlaneseq  ;;  %vm13_vm0 = vcmask 1040384   ;;  %s68_s0 = inlined_call_operand.vmem [shape: f32[3,128], index: 0, kind: input, shape index: {}]   ;;  %s69_s1 = inlined_call_operand.vmem [shape: f32[3,128], index: 1, kind: output, shape index: {}]  }
   0x1   :  { %v8_v1 = vld [vmem:[%s68_s0] sm:$0x7] }
   0x2   :  { %v10_v2 = vand.u32 127, %v9_v0  ;;  %33 = vst [vmem:[%s69_s1 - $0x1] sm:$0x4] %v8_v1  ;;  %v26_v11 = vrot.slane %v8_v1, 1 }
   0x4   :  { %vm11_vm1 = vcmp.lt.s32.totalorder %v10_v2, 4 }
   0x5   :  { %v12_v3 = vsel %vm11_vm1, %v8_v1, -inf }
   0x6   :  { %v14_v4 = vsel %vm13_vm0, %v12_v3, -inf }
   0x7   :  { %15 = vmax.xlane.f32.xlu0 %v14_v4 }
  0x94   :  { %v16_v5 = vpop.xlane.xlu0 %15 }
  0x95   :  { %v17_v6 = vsub.f32 %v12_v3, %v16_v5 }
  0x97   :  { %v18_v7 = vmul.f32 1.442695, %v17_v6 }
  0x99   :  { %39 = vpow2.f32 %v18_v7 }
  0xa3   :  { %v40_v8 = vpop.eup %39 }
  0xa4   :  { %v20_v9 = vsel %vm13_vm0, %v40_v8, 0.0 }
  0xa5   :  { %21 = vadd.xlane.f32.xlu0 %v20_v9 }
 0x132   :  { %v22_v10 = vpop.xlane.xlu0 %21 }
 0x133   :  { %41 = vrcp.f32 %v22_v10 }
 0x13d   :  { %v42_v12 = vpop.eup %41 }
 0x13e   :  { %v24_v13 = vmul.f32 %v42_v12, %v40_v8 }
 0x140   :  { %v28_v14 = vmul.f32 %v26_v11, %v24_v13  ;;  %32 = vst [vmem:[%s69_s1] sm:$0x1] %v24_v13 }
 0x142   :  { %v29_v15 = vsel %vm13_vm0, %v28_v14, 0.0 }
 0x143   :  { %30 = vadd.xlane.f32.xlu1 %v29_v15 }
 0x1d0   :  { %v31_v16 = vpop.xlane.xlu1 %30 }
 0x1d1   :  { %34 = vst [vmem:[%s69_s1 + $0x2] sm:$0x1] %v31_v16 }

</bundles_post_ra>
